<compile_context>
chip_gen: v7x
topology: tpu7x:2x2x1
jax: 0.10.0
libtpu: 0.0.40
codegen_flags: <defaults>
</compile_context>

<pallas_src>
import jax
import jax.numpy as jnp
from jax.experimental import pallas as pl
from jax.experimental.pallas import tpu as pltpu


# ----------------------------- kernel body ---------------------------------


def _integrator_kernel(comps_ref, content_ref, wa_ref, wb_ref, b_ref, o_ref):
    # comps_ref:   (Bb, C_comp,    tile)
    # content_ref: (Bb, C_content, tile)
    # wa_ref: (C_out, C_comp)   wb_ref: (C_out, C_content)   b_ref: (C_out, 1) f32
    # o_ref:  (Bb, C_out, tile)
    wa = wa_ref[...]
    wb = wb_ref[...]
    b = b_ref[...]
    for i in range(comps_ref.shape[0]):  # static unroll over the batch block
        acc = jnp.dot(wa, comps_ref[i], preferred_element_type=jnp.float32)
        acc = acc + jnp.dot(wb, content_ref[i], preferred_element_type=jnp.float32)
        o_ref[i] = (acc + b).astype(o_ref.dtype)


# --------------------------- tiling heuristics ------------------------------


def _round_up(x, m):
    return ((x + m - 1) // m) * m


def _vmem_limit_bytes():
    """~75% of physical VMEM (96 MiB on v5e/v6e, 48 MiB on v7x), capped at 100 MiB."""
    cap = 64 * 1024 * 1024  # conservative fallback (v7x-sized)
    try:
        info = pltpu.get_tpu_info()
        cap = int(getattr(info, "vmem_capacity_bytes", cap))
    except Exception:
        pass
    return min((cap * 3) // 4, 100 * 1024 * 1024)


def _choose_tiling(B, c_sum, HW, itemsize, vmem_limit):
    """Pick (batch block Bb, spatial lane tile).

    Targets ~2 MiB of activation traffic per grid step, keeps the
    double-buffered activation blocks inside ~60% of the VMEM budget, and
    keeps >= 2 grid steps on a parallel axis (v7x megacore sharding).
    """
    lane_bytes = c_sum * itemsize                       # bytes per (batch, spatial) lane
    target_bytes = 2 << 20                              # ~2 MiB per grid step
    data_budget = int(vmem_limit * 0.6)                 # double-buffered activation blocks
    max_lanes = max(128, data_budget // (2 * lane_bytes))
    target_lanes = min(max(128, target_bytes // lane_bytes), max_lanes)

    # Spatial (lane) tile: full extent when it fits, else a 128-multiple.
    if HW <= target_lanes:
        tile = HW
    else:
        tile = max(128, (target_lanes // 128) * 128)

    # Batch blocking when the spatial extent alone is too small a payload.
    Bb = 1
    if B > 1 and lane_bytes * tile < target_bytes:
        Bb = min(B, max(1, target_bytes // max(1, lane_bytes * tile)), 8)
        while Bb > 1 and 2 * Bb * lane_bytes * tile > data_budget:
            Bb -= 1

    # Guarantee >= 2 grid steps on a parallel axis when possible (v7x: 2 TCs).
    if pl.cdiv(B, Bb) * pl.cdiv(HW, tile) < 2:
        if HW >= 256:
            tile = min(tile, _round_up(pl.cdiv(HW, 2), 128))
        elif B >= 2:
            Bb = pl.cdiv(B, 2)

    return Bb, tile


# ------------------------------- wrapper ------------------------------------


def integrator_forward(comps, content, weight, bias):
    """1x1-conv Integrator forward in native NCHW layout.

    Args:
      comps:   (B, C_comp, H, W)
      content: (B, C_content, H, W)
      weight:  (C_out, C_comp + C_content, 1, 1)  -- PyTorch Conv2d layout
      bias:    (C_out,)
    Returns:
      (B, C_out, H, W), same dtype as `comps` (run bf16 for 2x HBM savings).
    """
    assert content is not None, "Integrator.forward requires `content`"
    B, C_comp, H, W = comps.shape
    _, C_content, _, _ = content.shape
    C_out, C_in = weight.shape[0], weight.shape[1]
    assert C_in == C_comp + C_content
    HW = H * W

    compute_dtype = comps.dtype
    itemsize = jnp.dtype(compute_dtype).itemsize

    vmem_limit = _vmem_limit_bytes()
    Bb, tile = _choose_tiling(B, C_comp + C_content + C_out, HW, itemsize, vmem_limit)
    grid = (pl.cdiv(B, Bb), pl.cdiv(HW, tile))

    # Free (contiguous) reshapes -- no transposes, no concatenation.
    comps3 = comps.reshape(B, C_comp, HW)
    content3 = content.reshape(B, C_content, HW).astype(compute_dtype)

    # Split the 1x1-conv weight so the channel concat is fused into the kernel.
    # Weights match the activation dtype (consistent MXU operands); bias stays
    # f32 since it is added to the f32 accumulator.
    w2d = weight.reshape(C_out, C_in).astype(compute_dtype)
    wa = w2d[:, :C_comp]             # (C_out, C_comp)
    wb = w2d[:, C_comp:]             # (C_out, C_content)
    b2d = bias.reshape(C_out, 1).astype(jnp.float32)

    flops = 2 * B * HW * C_out * C_in
    bytes_accessed = (itemsize * B * HW * (C_in + C_out)
                      + wa.size * itemsize + wb.size * itemsize + b2d.size * 4)

    out3 = pl.pallas_call(
        _integrator_kernel,
        out_shape=jax.ShapeDtypeStruct((B, C_out, HW), compute_dtype),
        grid_spec=pltpu.PrefetchScalarGridSpec(
            num_scalar_prefetch=0,
            grid=grid,
            in_specs=[
                pl.BlockSpec((Bb, C_comp, tile), lambda b, j: (b, 0, j)),
                pl.BlockSpec((Bb, C_content, tile), lambda b, j: (b, 0, j)),
                # Grid-invariant weight / bias blocks stay resident in VMEM.
                pl.BlockSpec((C_out, C_comp), lambda b, j: (0, 0)),
                pl.BlockSpec((C_out, C_content), lambda b, j: (0, 0)),
                pl.BlockSpec((C_out, 1), lambda b, j: (0, 0)),
            ],
            out_specs=pl.BlockSpec((Bb, C_out, tile), lambda b, j: (b, 0, j)),
        ),
        compiler_params=pltpu.CompilerParams(
            dimension_semantics=("parallel", "parallel"),
            vmem_limit_bytes=int(vmem_limit),
        ),
        cost_estimate=pl.CostEstimate(
            flops=int(flops), transcendentals=0, bytes_accessed=int(bytes_accessed)),
    )(comps3, content3, wa, wb, b2d)

    return out3.reshape(B, C_out, H, W)


def init_params(key, C, C_content):
    """Deterministic xavier-uniform init for the 1x1 conv (weight_init='xavier')."""
    C_in = C + C_content
    fan_in, fan_out = C_in, C        # 1x1 kernel
    limit = jnp.sqrt(6.0 / (fan_in + fan_out))
    kw, _ = jax.random.split(key)
    weight = jax.random.uniform(kw, (C, C_in, 1, 1), jnp.float32, -limit, limit)
    bias = jnp.zeros((C,), jnp.float32)
    return weight, bias


if __name__ == "__main__":
    key = jax.random.PRNGKey(0)
    k_comps, k_content, k_params = jax.random.split(key, 3)

    B, C, C_content, H, W = 2, 4, 4, 16, 16
    comps = jax.random.normal(k_comps, (B, C, H, W), jnp.float32)
    content = jax.random.normal(k_content, (B, C_content, H, W), jnp.float32)
    weight, bias = init_params(k_params, C, C_content)

    out = integrator_forward(comps, content, weight, bias)
    out = jax.block_until_ready(out)

    # Reference check in plain JAX (1x1 conv == channel matmul).
    x = jnp.concatenate([comps, content], axis=1)
    ref = jnp.einsum("bihw,oi->bohw", x, weight.reshape(C, C + C_content)) \
        + bias[None, :, None, None]
    assert out.shape == (B, C, H, W)
    assert jnp.allclose(out, ref, atol=1e-5, rtol=1e-5), "f32 mismatch vs reference"

    # bf16 activation path (memory-bound kernel: halves HBM traffic).
    out_bf16 = integrator_forward(comps.astype(jnp.bfloat16),
                                  content.astype(jnp.bfloat16), weight, bias)
    out_bf16 = jax.block_until_ready(out_bf16)
    assert out_bf16.shape == (B, C, H, W)
    assert out_bf16.dtype == jnp.bfloat16
    assert jnp.allclose(out_bf16.astype(jnp.float32), ref, atol=1.5e-1, rtol=5e-2), \
        "bf16 mismatch vs reference"

    print("KERNEL_OK")
</pallas_src>

<mosaic_0001>
module attributes {stable_mosaic.version = 11 : i64} {
  func.func @_integrator_kernel(%arg0: i32, %arg1: i32, %arg2: memref<2x4x128xf32, #tpu.memory_space<vmem>>, %arg3: memref<2x4x128xf32, #tpu.memory_space<vmem>>, %arg4: memref<4x4xf32, #tpu.memory_space<vmem>>, %arg5: memref<4x4xf32, #tpu.memory_space<vmem>>, %arg6: memref<4x1xf32, #tpu.memory_space<vmem>>, %arg7: memref<2x4x128xf32, #tpu.memory_space<vmem>>) attributes {dimension_semantics = [#tpu.dimension_semantics<parallel>, #tpu.dimension_semantics<parallel>], iteration_bounds = array<i64: 1, 2>, scalar_prefetch = 0 : i64, scratch_operands = 0 : i64, tpu.core_type = #tpu.core_type<tc>, window_params = [{transform_indices = @transform_0, window_bounds = array<i64: 2, 4, 128>}, {transform_indices = @transform_1, window_bounds = array<i64: 2, 4, 128>}, {pipeline_mode = #tpu.pipeline_mode<synchronous>, transform_indices = @transform_2, window_bounds = array<i64: 4, 4>}, {pipeline_mode = #tpu.pipeline_mode<synchronous>, transform_indices = @transform_3, window_bounds = array<i64: 4, 4>}, {pipeline_mode = #tpu.pipeline_mode<synchronous>, transform_indices = @transform_4, window_bounds = array<i64: 4, 1>}, {transform_indices = @transform_5, window_bounds = array<i64: 2, 4, 128>}]} {
    %c0 = arith.constant 0 : index
    %c0_0 = arith.constant 0 : index
    %0 = vector.load %arg4[%c0, %c0_0] : memref<4x4xf32, #tpu.memory_space<vmem>>, vector<4x4xf32>
    %c0_1 = arith.constant 0 : index
    %c0_2 = arith.constant 0 : index
    %1 = vector.load %arg5[%c0_1, %c0_2] : memref<4x4xf32, #tpu.memory_space<vmem>>, vector<4x4xf32>
    %c0_3 = arith.constant 0 : index
    %c0_4 = arith.constant 0 : index
    %2 = vector.load %arg6[%c0_3, %c0_4] : memref<4x1xf32, #tpu.memory_space<vmem>>, vector<4x1xf32>
    %c0_5 = arith.constant 0 : index
    %c0_6 = arith.constant 0 : index
    %c0_7 = arith.constant 0 : index
    %3 = vector.load %arg2[%c0_5, %c0_6, %c0_7] : memref<2x4x128xf32, #tpu.memory_space<vmem>>, vector<1x4x128xf32>
    %4 = vector.shape_cast %3 : vector<1x4x128xf32> to vector<4x128xf32>
    %cst = arith.constant dense<0.000000e+00> : vector<4x128xf32>
    %5 = tpu.matmul %0, %4, %cst {dimension_numbers = #tpu.dot_dimension_numbers<[1], [0], [0], [1], [0, 0, 1, 1], [], []>} : vector<4x4xf32>, vector<4x128xf32>, vector<4x128xf32> -> vector<4x128xf32>
    %c0_8 = arith.constant 0 : index
    %c0_9 = arith.constant 0 : index
    %c0_10 = arith.constant 0 : index
    %6 = vector.load %arg3[%c0_8, %c0_9, %c0_10] : memref<2x4x128xf32, #tpu.memory_space<vmem>>, vector<1x4x128xf32>
    %7 = vector.shape_cast %6 : vector<1x4x128xf32> to vector<4x128xf32>
    %cst_11 = arith.constant dense<0.000000e+00> : vector<4x128xf32>
    %8 = tpu.matmul %1, %7, %cst_11 {dimension_numbers = #tpu.dot_dimension_numbers<[1], [0], [0], [1], [0, 0, 1, 1], [], []>} : vector<4x4xf32>, vector<4x128xf32>, vector<4x128xf32> -> vector<4x128xf32>
    %9 = arith.addf %5, %8 : vector<4x128xf32>
    %10 = vector.broadcast %2 : vector<4x1xf32> to vector<4x128xf32>
    %11 = arith.addf %9, %10 : vector<4x128xf32>
    %c0_12 = arith.constant 0 : index
    %c0_13 = arith.constant 0 : index
    %c0_14 = arith.constant 0 : index
    %12 = vector.load %arg7[%c0_12, %c0_13, %c0_14] : memref<2x4x128xf32, #tpu.memory_space<vmem>>, vector<1x4x128xf32>
    %13 = vector.shape_cast %12 : vector<1x4x128xf32> to vector<4x128xf32>
    %14 = vector.shape_cast %11 : vector<4x128xf32> to vector<1x4x128xf32>
    tpu.vector_store %arg7[%c0_12, %c0_13, %c0_14], %14 {strides = array<i32>} : memref<2x4x128xf32, #tpu.memory_space<vmem>>, vector<1x4x128xf32>,
    %c1 = arith.constant 1 : index
    %c0_15 = arith.constant 0 : index
    %c0_16 = arith.constant 0 : index
    %15 = vector.load %arg2[%c1, %c0_15, %c0_16] : memref<2x4x128xf32, #tpu.memory_space<vmem>>, vector<1x4x128xf32>
    %16 = vector.shape_cast %15 : vector<1x4x128xf32> to vector<4x128xf32>
    %cst_17 = arith.constant dense<0.000000e+00> : vector<4x128xf32>
    %17 = tpu.matmul %0, %16, %cst_17 {dimension_numbers = #tpu.dot_dimension_numbers<[1], [0], [0], [1], [0, 0, 1, 1], [], []>} : vector<4x4xf32>, vector<4x128xf32>, vector<4x128xf32> -> vector<4x128xf32>
    %c1_18 = arith.constant 1 : index
    %c0_19 = arith.constant 0 : index
    %c0_20 = arith.constant 0 : index
    %18 = vector.load %arg3[%c1_18, %c0_19, %c0_20] : memref<2x4x128xf32, #tpu.memory_space<vmem>>, vector<1x4x128xf32>
    %19 = vector.shape_cast %18 : vector<1x4x128xf32> to vector<4x128xf32>
    %cst_21 = arith.constant dense<0.000000e+00> : vector<4x128xf32>
    %20 = tpu.matmul %1, %19, %cst_21 {dimension_numbers = #tpu.dot_dimension_numbers<[1], [0], [0], [1], [0, 0, 1, 1], [], []>} : vector<4x4xf32>, vector<4x128xf32>, vector<4x128xf32> -> vector<4x128xf32>
    %21 = arith.addf %17, %20 : vector<4x128xf32>
    %22 = vector.broadcast %2 : vector<4x1xf32> to vector<4x128xf32>
    %23 = arith.addf %21, %22 : vector<4x128xf32>
    %c1_22 = arith.constant 1 : index
    %c0_23 = arith.constant 0 : index
    %c0_24 = arith.constant 0 : index
    %24 = vector.load %arg7[%c1_22, %c0_23, %c0_24] : memref<2x4x128xf32, #tpu.memory_space<vmem>>, vector<1x4x128xf32>
    %25 = vector.shape_cast %24 : vector<1x4x128xf32> to vector<4x128xf32>
    %26 = vector.shape_cast %23 : vector<4x128xf32> to vector<1x4x128xf32>
    tpu.vector_store %arg7[%c1_22, %c0_23, %c0_24], %26 {strides = array<i32>} : memref<2x4x128xf32, #tpu.memory_space<vmem>>, vector<1x4x128xf32>,
    return
  }
  func.func @transform_0(%arg0: i32, %arg1: i32) -> (i32, i32, i32) {
    %c0_i32 = arith.constant 0 : i32
    %c0_i32_0 = arith.constant 0 : i32
    return %arg0, %c0_i32, %arg1 : i32, i32, i32
  }
  func.func @transform_1(%arg0: i32, %arg1: i32) -> (i32, i32, i32) {
    %c0_i32 = arith.constant 0 : i32
    %c0_i32_0 = arith.constant 0 : i32
    return %arg0, %c0_i32, %arg1 : i32, i32, i32
  }
  func.func @transform_2(%arg0: i32, %arg1: i32) -> (i32, i32) {
    %c0_i32 = arith.constant 0 : i32
    %c0_i32_0 = arith.constant 0 : i32
    %c0_i32_1 = arith.constant 0 : i32
    return %c0_i32, %c0_i32_0 : i32, i32
  }
  func.func @transform_3(%arg0: i32, %arg1: i32) -> (i32, i32) {
    %c0_i32 = arith.constant 0 : i32
    %c0_i32_0 = arith.constant 0 : i32
    %c0_i32_1 = arith.constant 0 : i32
    return %c0_i32, %c0_i32_0 : i32, i32
  }
  func.func @transform_4(%arg0: i32, %arg1: i32) -> (i32, i32) {
    %c0_i32 = arith.constant 0 : i32
    %c0_i32_0 = arith.constant 0 : i32
    %c0_i32_1 = arith.constant 0 : i32
    return %c0_i32, %c0_i32_0 : i32, i32
  }
  func.func @transform_5(%arg0: i32, %arg1: i32) -> (i32, i32, i32) {
    %c0_i32 = arith.constant 0 : i32
    %c0_i32_0 = arith.constant 0 : i32
    return %arg0, %c0_i32, %arg1 : i32, i32, i32
  }
}

</mosaic_0001>

<bundles_post_ra>
// kernel: tpu_custom_call.1
= control target key start
LH: loop header
LB: loop body
LE: loop exit
PB: predicated region body
PF: predicated region fallthrough
CT: control target
= control target key end

     0   :  { %s1331_s0 = inlined_call_operand.hbm [shape: f32[2,4,256], index: 0, kind: input, shape index: {}]   ;;  %s1332_s1 = inlined_call_operand.hbm [shape: f32[2,4,256], index: 1, kind: input, shape index: {}]   ;;  %s1333_s2 = inlined_call_operand.vmem [shape: f32[4,4], index: 2, kind: input, shape index: {}]   ;;  %s1334_s3 = inlined_call_operand.vmem [shape: f32[4,4], index: 3, kind: input, shape index: {}]   ;;  %s1335_s4 = inlined_call_operand.vmem [shape: f32[4,1], index: 4, kind: input, shape index: {}]   ;;  %s1336_s5 = inlined_call_operand.hbm [shape: f32[2,4,256], index: 5, kind: output, shape index: {}]  }
   0x1   :  { %1341 = sst [smem:[#allocation12_spill]] %s1331_s0 }
   0x2   :  { %10 = vsyncpa [#allocation3], 0 }
   0x3   :  { %12 = vsyncpa [#allocation3 + $0x1], 0 }
   0x4   :  { %13 = vsyncpa [#allocation6], 0 }
   0x5   :  { %15 = vsyncpa [#allocation6 + $0x1], 0 }
   0x6   :  { %16 = vsyncpa [#allocation4], 0 }
   0x7   :  { %18 = vsyncpa [#allocation4 + $0x1], 0  ;;  %s1075_s18 = smov 0   ;;  %s1077_s19 = smov 0  }
   0x8   :  { %s1079_s20 = smov 0   ;;  %s1081_s21 = smov 0  }
   0x9   :  { %s1083_s22 = smov 0   ;;  %s1085_s23 = smov 0  }
   0xa LB: > { %s753_s24 = sadd.s32 4294967295, %s1031_s23   ;;  %s754_s25 = sadd.s32 4294967294, %s1031_s23   ;;  %s1031_s23 = sphi %s1085_s23, %s24_s23   ;;  %s1027_s22 = sphi %s1083_s22, %s1360_s22   ;;  %s1023_s21 = sphi %s1081_s21, %s1359_s21   ;;  %s1019_s20 = sphi %s1079_s20, %s1358_s20   ;;  %s1015_s19 = sphi %s1077_s19, %s1357_s19   ;;  %s1011_s18 = sphi %s1075_s18, %s1356_s18  }
   0xb   : > { %s33_s26 = sadd.s32 1, %s1027_s22  ;;  %s45_s27 = sadd.s32 1, %s1019_s20 }
   0xc   : > { %p34_p0 = scmp.ge.s32.totalorder %s33_s26, 2  ;;  %p52_p1 = scmp.ne.s32.totalorder %s1019_s20, %s1015_s19 }
   0xd   : > { %p53_p2 = scmp.eq.s32.totalorder %s1031_s23, 0  ;;  %p58_p3 = scmp.ne.s32.totalorder %s1015_s19, %s1011_s18 }
   0xe   : > { %s1362_s26 = smov (%p34_p0, %s33_s26), 0  ;;  %p59_p5 = scmp.eq.s32.totalorder %s753_s24, 0 }
   0xf   : > { %1342 = sst [smem:[#allocation11_spill]] %s1362_s26  ;;  %p1116_p4 = por %p53_p2, %p52_p1 }
  0x10   : > { %s41_s29 = ssub.s32 %s1027_s22, %s1362_s26  ;;  %p175_p6 = scmp.eq.s32.totalorder %s753_s24, 1 }
  0x11   : > { %p43_p7 = scmp.eq.s32.totalorder %s41_s29, 0  ;;  %p1122_p8 = por %p59_p5, %p58_p3 }
  0x12   : > { %p1126_p9 = por %p175_p6, %p52_p1  ;;  %p181_p10 = scmp.eq.s32.totalorder %s754_s25, 1 }
  0x13   : > { %s1344_s30 = scalar_select %p1122_p8, 1, 0 }
  0x14   : > { %s1345_s6 = scalar_select %p1126_p9, 1, 0 }
  0x15   : > { %s1131_s7 = scalar_select %p43_p7, %s1019_s20, %s45_s27  }
  0x16   : > { %p1133_p11 = por %p181_p10, %p58_p3  ;;  %p825_p13 = scmp.lt.s32.totalorder %s1031_s23, 2 }
  0x17   : > { %s1140_s9 = sand.u32 1, %s1019_s20   ;;  %s758_s11 = sshll.u32 %s1027_s22, 6 }
  0x18   : > { %s1346_s8 = scalar_select %p1133_p11, 1, 0 }
  0x19   : > { %s757_s10 = sshll.u32 %s1140_s9, 3  ;;  %s1347_s0 = sld [smem:[#allocation12_spill]] }
  0x1a   : > { %s214_s15 = scalar_lea.vmem [#allocation2], %s757_s10  ;;  %p1157_p0 = pnand %p825_p13, %p1116_p4 }
  0x1b   : > { %s223_s16 = sshll.u32 %s214_s15, 4  ;;  %s211_s24 = scalar_lea.sflag [#allocation3], %s1140_s9  ;;  %s1153_s16 = int_to_ptr.vmem [resolvable:$true] %s223_s16 }
  0x1c   : > { %p887_p2 = pneg %p1157_p0 }
  0x1f   : > { %s1149_s14 = scalar_lea.hbm %s1347_s0, %s758_s11  ;;  %s890_s12 = scalar_lea.hbm %s1347_s0, 256 }
  0x20   : > { %s885_s25 = scalar_lea.hbm %s1149_s14, 128  ;;  %p891_p4 = scmp.lt.u32.totalorder %s1149_s14, %s1347_s0 }
  0x21   : > { %p886_p1 = scmp.ne.s32.totalorder %s1149_s14, %s885_s25  ;;  %p892_p6 = scmp.lt.u32.totalorder %s890_s12, %s885_s25 }
  0x22   : > { %p894_p10 = scmp.lt.u32.totalorder %s885_s25, %s1149_s14 }
  0x23   : > { %p888_p3 = pnand %p887_p2, %p886_p1  ;;  %p893_p7 = por %p892_p6, %p891_p4 }
  0x25   : > { %p889_p5 = pneg %p888_p3  ;;  %p895_p13 = por %p894_p10, %p893_p7 }
  0x27   : > { %p896_p12 = pnand %p895_p13, %p889_p5 }
  0x29   : > { %899 = shalt.err (!%p896_p12)
}
  0x2a   : > { %s900_s15 = scalar_lea.vmem %s1153_s16, 128  ;;  %s1033_s27 = smov [#allocation2]  }
  0x2b   : > { %p901_p1 = scmp.ne.s32.totalorder %s1153_s16, %s900_s15  ;;  %s905_s29 = sshll.u32 %s1033_s27, 4  ;;  %s906_s29 = int_to_ptr.vmem [resolvable:$false] %s905_s29 }
  0x2c   : > { %s907_s28 = scalar_lea.vmem %s906_s29, 256  ;;  %p908_p9 = scmp.lt.s32.totalorder %s1153_s16, %s906_s29 }
  0x2d   : > { %p903_p3 = pnand %p901_p1, %p887_p2  ;;  %p909_p4 = scmp.lt.s32.totalorder %s907_s28, %s900_s15 }
  0x2f   : > { %p904_p11 = pneg %p903_p3  ;;  %p910_p6 = por %p909_p4, %p908_p9 }
  0x31   : > { %p911_p7 = pnand %p910_p6, %p904_p11 }
  0x33   : > { %914 = shalt.err (!%p911_p7)
}
  0x34   : > { %s1339_s25 = smov 128   ;;  %s1035_s12 = smov 64  }
  0x35   : > { %s1036_s13 = smov 4   ;;  %p761_p9 = scmp.ge.s32.totalorder %s1031_s23, 1 }
  0x36   : > { %817 = dma.hbm_to_vmem [thread:$0]  (!%p1157_p0), %s1149_s14, 128, %s1153_s16, %s211_s24, %s1339_s25, %s1035_s12, %s1036_s13  }
  0x37   : > { %p254_p11 = scmp.lt.s32.totalorder %s1031_s23, 3  ;;  %s1203_s28 = scalar_lea.hbm %s1332_s1, %s758_s11 }
  0x38   : > { %s237_s0 = scalar_lea.vmem [#allocation5], %s757_s10  ;;  %s234_s14 = scalar_lea.sflag [#allocation6], %s1140_s9 }
  0x39   : > { %p1194_p12 = pnand %p761_p9, %p254_p11  ;;  %s246_s26 = sshll.u32 %s237_s0, 4  ;;  %s1207_s26 = int_to_ptr.vmem [resolvable:$true] %s246_s26 }
  0x3a   : > { %s915_s16 = scalar_lea.hbm %s1203_s28, 128  ;;  %s920_s11 = scalar_lea.hbm %s1332_s1, 256 }
  0x3b   : > { %p916_p5 = scmp.ne.s32.totalorder %s1203_s28, %s915_s16  ;;  %p921_p1 = scmp.lt.u32.totalorder %s1203_s28, %s1332_s1 }
  0x3c   : > { %p922_p3 = scmp.lt.u32.totalorder %s920_s11, %s915_s16  ;;  %p924_p6 = scmp.lt.u32.totalorder %s915_s16, %s1203_s28 }
  0x3d   : > { %p918_p10 = pnand %p916_p5, %p887_p2 }
  0x3e   : > { %p923_p4 = por %p922_p3, %p921_p1 }
  0x3f   : > { %p919_p13 = pneg %p918_p10 }
  0x40   : > { %p925_p7 = por %p924_p6, %p923_p4 }
  0x42   : > { %p926_p9 = pnand %p925_p7, %p919_p13 }
  0x44   : > { %929 = shalt.err (!%p926_p9)
}
  0x45   : > { %s930_s0 = scalar_lea.vmem %s1207_s26, 128  ;;  %s1037_s10 = smov [#allocation5]  }
  0x46   : > { %p931_p11 = scmp.ne.s32.totalorder %s1207_s26, %s930_s0  ;;  %s935_s24 = sshll.u32 %s1037_s10, 4  ;;  %s936_s24 = int_to_ptr.vmem [resolvable:$false] %s935_s24 }
  0x47   : > { %s937_s25 = scalar_lea.vmem %s936_s24, 256  ;;  %p938_p8 = scmp.lt.s32.totalorder %s1207_s26, %s936_s24 }
  0x48   : > { %p933_p5 = pnand %p931_p11, %p887_p2  ;;  %p939_p1 = scmp.lt.s32.totalorder %s937_s25, %s930_s0 }
  0x4a   : > { %p934_p10 = pneg %p933_p5  ;;  %p940_p3 = por %p939_p1, %p938_p8 }
  0x4c   : > { %p941_p4 = pnand %p940_p3, %p934_p10 }
  0x4e   : > { %944 = shalt.err (!%p941_p4)
}
  0x4f   : > { %s1350_s16 = smov 128   ;;  %258 = sbr.rel (%p1194_p12) target bundleno = 330 (0x14a), region = 40 }
  0x50   : > { %820 = dma.hbm_to_vmem [thread:$0]  (!%p1157_p0), %s1203_s28, 128, %s1207_s26, %s234_s14, %s1350_s16, %s1035_s12, %s1036_s13  }
  0x51   : > { %s1241_s27 = sand.u32 (!%p1194_p12), 1, %s1015_s19   ;;  %p1351_p8 = scmp.ne.s32.totalorder (!%p1194_p12), %s1344_s30, 0 }
  0x52   : > { %s1244_s11 = sshll.u32 (!%p1194_p12), %s1241_s27, 3  ;;  %s261_s17 = scalar_lea.sflag (!%p1194_p12), [#allocation3], %s1241_s27 }
  0x53   : > { %s264_s29 = scalar_lea.vmem (!%p1194_p12), [#allocation2], %s1244_s11 }
  0x56   : > { %998 = dma.done.wait (%p1351_p8), %s261_s17, 128  }
  0x57   : > { %1000 = vsyncadd (%p1351_p8), %s261_s17, 4294967168  ;;  %s270_s26 = scalar_lea.sflag [#allocation6], %s1241_s27  ;;  %s273_s9 = scalar_lea.vmem [#allocation5], %s1244_s11 }
  0x58   : > { %1002 = dma.done.wait (%p1351_p8), %s270_s26, 128  }
  0x59   : > { %1004 = vsyncadd (%p1351_p8), %s270_s26, 4294967168  ;;  %v1038_v0 = vmov 0.0   ;;  %vm1039_vm0 = vmmov 0   ;;  %v1040_v1 = vmov 0   ;;  %vm317_vm1 = vcmask 1043456   ;;  %s304_s0 = scalar_lea.vmem [#allocation7], %s1244_s11 }
  0x5a   : > { %788 = vmatprep.subr.mxu0 %v1038_v0  ;;  %793 = vmatprep.subr.mxu1 %v1038_v0  ;;  %vm313_vm2 = vcmask 31744   ;;  %v312_v2 = vld [vmem:[%s273_s9] sm:$0xf]  ;;  %v311_v3 = vld [vmem:[%s264_s29] sm:$0xf]  ;;  %s643_s10 = sshll.u32 %s304_s0, 4  ;;  %s1277_s10 = int_to_ptr.vmem [resolvable:$true] %s643_s10 }
  0x5b   : > { %790 = vmatprep.mubr.msk.f32.mxu0 %vm1039_vm0, %v1038_v0  ;;  %795 = vmatprep.mubr.msk.f32.mxu1 %vm1039_vm0, %v1038_v0  ;;  %v309_v4 = vld [vmem:[%s1334_s3] sm:$0xf]  ;;  %v770_v6 = vld [vmem:[%s273_s9 + $0x4] sm:$0xf]  ;;  %v769_v7 = vld [vmem:[%s264_s29 + $0x4] sm:$0xf] }
  0x5c   : > { %884 = vset.pattern.permute.xlu0 %v1040_v1  ;;  %789 = vmatpush3.msk.msra.mxu0 %vm317_vm1, %v312_v2  ;;  %v308_v5 = vld [vmem:[%s1333_s2] sm:$0xf]  ;;  %s777_s24 = sshll.u32 %s1023_s21, 6  ;;  %s628_s11 = scalar_lea.sflag [#allocation4], %s1241_s27 }
  0x5d   : > { %794 = vmatpush3.msk.msra.mxu1 %vm317_vm1, %v311_v3  ;;  %791 = vmatmul.mubr.msk.f32.vlgmr.msra.gmra.mrb[0].mxu0 %vm313_vm2, %v309_v4  ;;  %v310_v8 = vld [vmem:[%s1335_s4] sm:$0xf]  ;;  %s1282_s17 = scalar_lea.hbm %s1336_s5, %s777_s24  ;;  %s945_s21 = scalar_lea.vmem %s1277_s10, 128 }
  0x5e   : > { %796 = vmatmul.mubr.msk.f32.vlgmr.msra.gmra.mrb[0].mxu1 %vm313_vm2, %v308_v5  ;;  %798 = vmatprep.subr.mxu0 %v1038_v0  ;;  %p946_p0 = scmp.ne.s32.totalorder %s1277_s10, %s945_s21  ;;  %p1352_p2 = scmp.ne.s32.totalorder %s1345_s6, 0 }
  0x5f   : > { %803 = vmatprep.subr.mxu1 %v1038_v0  ;;  %799 = vmatpush3.msk.msra.mxu0 %vm317_vm1, %v770_v6  ;;  %s1041_s29 = smov [#allocation7]  }
  0x60   : > { %804 = vmatpush3.msk.msra.mxu1 %vm317_vm1, %v769_v7  ;;  %800 = vmatprep.mubr.msk.f32.mxu0 %vm1039_vm0, %v1038_v0  ;;  %p947_p12 = pnand %p946_p0, %p1352_p2  ;;  %s949_s26 = sshll.u32 %s1041_s29, 4  ;;  %s950_s26 = int_to_ptr.vmem [resolvable:$false] %s949_s26 }
  0x61   : > { %805 = vmatprep.mubr.msk.f32.mxu1 %vm1039_vm0, %v1038_v0  ;;  %801 = vmatmul.mubr.msk.f32.vlgmr.msra.gmra.mrb[2].mxu0 %vm313_vm2, %v309_v4  ;;  %s951_s9 = scalar_lea.vmem %s950_s26, 256  ;;  %p952_p6 = scmp.lt.s32.totalorder %s1277_s10, %s950_s26 }
  0x62   : > { %806 = vmatmul.mubr.msk.f32.vlgmr.msra.gmra.mrb[2].mxu1 %vm313_vm2, %v308_v5  ;;  %469 = vperm.xlu0 %884, %v310_v8   ;;  %p948_p13 = pneg %p947_p12  ;;  %p953_p7 = scmp.lt.s32.totalorder %s951_s9, %s945_s21 }
  0x64   : > { %p954_p9 = por %p953_p7, %p952_p6 }
  0x66   : > { %p955_p11 = pnand %p954_p9, %p948_p13 }
  0xe1   : > { %v470_v9 = vpop.permute.xlu0 %469 }
 0x130   : > { %v387_v10 = vpop.f32.mrb[0].mxu0 }
 0x131   : > { %v463_v11 = vpop.f32.mrb[0].mxu1  ;;  %v792_v13 = vpop.f32.mrb[1].mxu0 }
 0x132   : > { %v464_v12 = vadd.f32 %v463_v11, %v387_v10  ;;  %v797_v14 = vpop.f32.mrb[1].mxu1 }
 0x134   : > { %v472_v15 = vadd.f32 %v470_v9, %v464_v12  ;;  %v547_v16 = vpop.f32.mrb[2].mxu0 }
 0x135   : > { %v620_v17 = vpop.f32.mrb[2].mxu1  ;;  %v802_v19 = vpop.f32.mrb[3].mxu0 }
 0x136   : > { %473 = vst [vmem:[%s304_s0] sm:$0xf] %v472_v15  ;;  %v621_v18 = vadd.f32 %v620_v17, %v547_v16  ;;  %v807_v20 = vpop.f32.mrb[3].mxu1 }
 0x138   : > { %v624_v21 = vadd.f32 %v621_v18, %v470_v9 }
 0x13a   : > { %775 = vst [vmem:[%s304_s0 + $0x4] sm:$0xf] %v624_v21 }
 0x13b   : > { %958 = shalt.err (!%p955_p11)
}
 0x13c   : > { %s959_s12 = scalar_lea.hbm %s1282_s17, 128  ;;  %s963_s15 = scalar_lea.hbm %s1336_s5, 256 }
 0x13d   : > { %p960_p5 = scmp.ne.s32.totalorder %s1282_s17, %s959_s12  ;;  %p964_p3 = scmp.lt.u32.totalorder %s1282_s17, %s1336_s5 }
 0x13e   : > { %p965_p4 = scmp.lt.u32.totalorder %s963_s15, %s959_s12  ;;  %p967_p0 = scmp.lt.u32.totalorder %s959_s12, %s1282_s17 }
 0x13f   : > { %p961_p10 = pnand %p960_p5, %p1352_p2 }
 0x140   : > { %p966_p8 = por %p965_p4, %p964_p3 }
 0x141   : > { %p962_p1 = pneg %p961_p10 }
 0x142   : > { %p968_p12 = por %p967_p0, %p966_p8 }
 0x144   : > { %p969_p13 = pnand %p968_p12, %p962_p1 }
 0x146   : > { %972 = shalt.err (!%p969_p13)
}
 0x147   : > { %s1042_s0 = smov 64   ;;  %s1043_s24 = smov 128  }
 0x148   : > { %s1044_s25 = smov 4  }
 0x149   : > { %812 = dma.vmem_to_hbm [thread:$0]  (%p1352_p2), %s1277_s10, 128, %s1282_s17, %s628_s11, %s1042_s0, %s1043_s24, %s1044_s25  }
 0x14a PF: > { %s658_s16 = sand.u32 1, %s1011_s18   ;;  %p1353_p6 = scmp.ne.s32.totalorder %s1346_s8, 0 }
 0x14b   : > { %p1354_p7 = scmp.ge.s32.totalorder %s1031_s23, 2  ;;  %s659_s21 = scalar_lea.sflag [#allocation4], %s658_s16 }
 0x14d   : > { %p822_p9 = pnand %p1354_p7, %p1353_p6 }
 0x14f   : > { %1006 = dma.done.wait (!%p822_p9), %s659_s21, 128  }
 0x150   : > { %1008 = vsyncadd (!%p822_p9), %s659_s21, 4294967168  ;;  %s24_s23 = sadd.s32 1, %s1031_s23   ;;  %s1355_s6 = sld [smem:[#allocation11_spill]] }
 0x151   : > { %p21_p11 = scmp.ge.s32.totalorder %s24_s23, 4   ;;  %s1356_s18 = smov %s1015_s19 }
 0x152   : > { %s1357_s19 = smov %s1019_s20  ;;  %s1358_s20 = smov %s1131_s7 }
 0x153   : > { %s1359_s21 = smov %s1027_s22  ;;  %23 = sbr.rel (!%p21_p11) target bundleno = 10 (0xa), region = 101 }
 0x156   : > { %s1360_s22 = smov %s1355_s6 }
 0x15a   :  { %664 = vsyncpa [#allocation3], 1 }
 0x15b   :  { %666 = vsyncpa [#allocation3 + $0x1], 1 }
 0x15c   :  { %667 = vsyncpa [#allocation6], 1 }
 0x15d   :  { %669 = vsyncpa [#allocation6 + $0x1], 1 }
 0x15e   :  { %670 = vsyncpa [#allocation4], 1 }
 0x15f   :  { %672 = vsyncpa [#allocation4 + $0x1], 1 }

</bundles_post_ra>
